<compile_context>
chip_gen: v5e
topology: v5e:2x2
jax: 0.10.0
libtpu: 0.0.40
codegen_flags: <defaults>
</compile_context>

<pallas_src>
import functools

import jax
import jax.numpy as jnp
from jax.experimental import pallas as pl
from jax.experimental.pallas import tpu as pltpu

EPS = 1e-5          # BatchNorm2d default eps
NEG_SLOPE = 0.2     # LeakyReLU negative slope
LANES = 128


def _round_up(a, b):
    return (a + b - 1) // b * b


# ----------------------------- pass 1 ---------------------------------------
def _conv_stats_kernel(x_ref, w_ref, g_ref, b_ref, y_ref, ss_ref, *, m_true):
    # x_ref:  (TM, K)      bf16 im2col patch tile
    # w_ref:  (K, CoutP)   bf16 conv weight matrix (resident)
    # g_ref:  (1, CoutP)   BN gamma (f32)
    # b_ref:  (1, CoutP)   BN beta  (f32)
    # y_ref:  (TM, CoutP)  f32 conv output tile
    # ss_ref: (8, CoutP)   f32 resident accumulator; rows 0/1 hold sum/sumsq
    #                      during the sweep and scale/shift after finalize.
    i = pl.program_id(0)

    # conv tile as a single MXU matmul (bf16 in, f32 accumulate)
    y = jnp.dot(x_ref[...], w_ref[...], preferred_element_type=jnp.float32)
    y_ref[...] = y

    @pl.when(i == 0)
    def _():
        ss_ref[...] = jnp.zeros_like(ss_ref)

    # global (over all M) per-channel partial sums
    ss_ref[0:1, :] += jnp.sum(y, axis=0, keepdims=True)
    ss_ref[1:2, :] += jnp.sum(y * y, axis=0, keepdims=True)

    @pl.when(i == pl.num_programs(0) - 1)
    def _():
        inv_m = 1.0 / m_true
        mean = ss_ref[0:1, :] * inv_m
        var = ss_ref[1:2, :] * inv_m - mean * mean        # biased batch variance
        scale = g_ref[...] * jax.lax.rsqrt(var + EPS)     # fold gamma * rsqrt
        shift = b_ref[...] - mean * scale
        ss_ref[0:1, :] = scale
        ss_ref[1:2, :] = shift


# ----------------------------- pass 2 ---------------------------------------
def _norm_act_kernel(ss_ref, y_ref, o_ref):
    scale = ss_ref[0:1, :]
    shift = ss_ref[1:2, :]
    z = y_ref[...] * scale + shift                        # fused BN scale/shift
    o_ref[...] = jnp.maximum(z, NEG_SLOPE * z)            # LeakyReLU(0.2)


# ----------------------------- wrapper ---------------------------------------
def double_conv_encoder(x_nchw, w_oihw, gamma, beta, *, tm_target=1024):
    """Forward pass of DoubleConv_Encoder (in_layer=False, bottle_neck=False)."""
    N, Cin, H, W = x_nchw.shape
    Cout, _, KH, KW = w_oihw.shape
    S, P = 2, 1
    Ho = (H + 2 * P - KH) // S + 1
    Wo = (W + 2 * P - KW) // S + 1

    M = N * Ho * Wo
    K = Cin * KH * KW
    CoutP = _round_up(Cout, LANES)              # lane-dense channel dim
    TM = min(tm_target, _round_up(M, 8))        # M-tile (sublane aligned)
    Mp = _round_up(M, TM)
    n_tiles = Mp // TM

    # --- im2col (data movement only; all FLOPs live in the kernels) ---------
    x_pad = jnp.pad(x_nchw, ((0, 0), (0, 0), (P, P), (P, P)))
    cols = []
    for kh in range(KH):
        for kw in range(KW):
            cols.append(x_pad[:, :, kh:kh + S * Ho:S, kw:kw + S * Wo:S])  # (N,Cin,Ho,Wo)
    patches = jnp.stack(cols, axis=2)                                     # (N,Cin,KH*KW,Ho,Wo)
    patches = patches.transpose(0, 3, 4, 1, 2).reshape(M, K)
    # zero rows pad M -> Mp; they contribute 0 to sum/sumsq so stats stay exact
    patches = jnp.pad(patches, ((0, Mp - M), (0, 0))).astype(jnp.bfloat16)

    # PyTorch conv weight (Cout, Cin, KH, KW) -> (K, CoutP), zero-padded channels
    w_mat = w_oihw.reshape(Cout, K).T
    w_mat = jnp.pad(w_mat, ((0, 0), (0, CoutP - Cout))).astype(jnp.bfloat16)

    gamma_p = jnp.pad(gamma.astype(jnp.float32), (0, CoutP - Cout),
                      constant_values=1.0).reshape(1, CoutP)
    beta_p = jnp.pad(beta.astype(jnp.float32), (0, CoutP - Cout)).reshape(1, CoutP)

    # --- pass 1: conv matmul + global BN stats -> (y, scale/shift) ----------
    y_flat, scale_shift = pl.pallas_call(
        functools.partial(_conv_stats_kernel, m_true=float(M)),
        grid=(n_tiles,),
        in_specs=[
            pl.BlockSpec((TM, K), lambda i: (i, 0)),        # patch tiles (streamed)
            pl.BlockSpec((K, CoutP), lambda i: (0, 0)),     # weight (resident)
            pl.BlockSpec((1, CoutP), lambda i: (0, 0)),     # gamma
            pl.BlockSpec((1, CoutP), lambda i: (0, 0)),     # beta
        ],
        out_specs=(
            pl.BlockSpec((TM, CoutP), lambda i: (i, 0)),    # y tiles
            pl.BlockSpec((8, CoutP), lambda i: (0, 0)),     # resident stats block
        ),
        out_shape=(
            jax.ShapeDtypeStruct((Mp, CoutP), jnp.float32),
            jax.ShapeDtypeStruct((8, CoutP), jnp.float32),
        ),
        compiler_params=pltpu.CompilerParams(
            dimension_semantics=("arbitrary",)),            # stats accumulate across M
    )(patches, w_mat, gamma_p, beta_p)

    # --- pass 2: normalize + LeakyReLU, streamed over M tiles ----------------
    out_flat = pl.pallas_call(
        _norm_act_kernel,
        grid=(n_tiles,),
        in_specs=[
            pl.BlockSpec((8, CoutP), lambda i: (0, 0)),     # scale/shift (resident)
            pl.BlockSpec((TM, CoutP), lambda i: (i, 0)),    # y tiles
        ],
        out_specs=pl.BlockSpec((TM, CoutP), lambda i: (i, 0)),
        out_shape=jax.ShapeDtypeStruct((Mp, CoutP), jnp.float32),
        compiler_params=pltpu.CompilerParams(
            dimension_semantics=("parallel",)),             # independent tiles
    )(scale_shift, y_flat)

    # strip padding, back to NCHW to match the PyTorch module's layout
    out = out_flat[:M, :Cout].reshape(N, Ho, Wo, Cout)
    return out.transpose(0, 3, 1, 2)


# ----------------------------- reference -------------------------------------
def reference(x_nchw, w_oihw, gamma, beta):
    """Pure-JAX f32 reference: lax conv + training-mode BN + LeakyReLU."""
    y = jax.lax.conv_general_dilated(
        x_nchw, w_oihw, window_strides=(2, 2), padding=[(1, 1), (1, 1)],
        dimension_numbers=("NCHW", "OIHW", "NCHW"))
    mean = jnp.mean(y, axis=(0, 2, 3), keepdims=True)
    var = jnp.mean((y - mean) ** 2, axis=(0, 2, 3), keepdims=True)
    y_hat = (y - mean) * jax.lax.rsqrt(var + EPS)
    z = y_hat * gamma.reshape(1, -1, 1, 1) + beta.reshape(1, -1, 1, 1)
    return jnp.where(z >= 0, z, NEG_SLOPE * z)


if __name__ == "__main__":
    key = jax.random.PRNGKey(0)
    k_x, k_w, k_g = jax.random.split(key, 3)

    # small shapes consistent with the module
    N, Cin, Cout, H, W = 2, 4, 8, 16, 16
    KH = KW = 4

    x = jax.random.normal(k_x, (N, Cin, H, W), dtype=jnp.float32)

    # kaiming_normal_(a=0, mode='fan_in') for the conv weight: std = sqrt(2 / fan_in)
    fan_in = Cin * KH * KW
    w = jax.random.normal(k_w, (Cout, Cin, KH, KW), dtype=jnp.float32) * jnp.sqrt(2.0 / fan_in)

    # BatchNorm2d params: weight ~ N(1.0, 0.02), bias = 0
    gamma = 1.0 + 0.02 * jax.random.normal(k_g, (Cout,), dtype=jnp.float32)
    beta = jnp.zeros((Cout,), dtype=jnp.float32)

    out = jax.block_until_ready(double_conv_encoder(x, w, gamma, beta))
    ref = jax.block_until_ready(reference(x, w, gamma, beta))

    assert out.shape == (N, Cout, H // 2, W // 2), out.shape
    # tolerance sized for bf16 MXU inputs (f32 accumulation, f32 BN math)
    assert jnp.allclose(out, ref, rtol=2e-2, atol=2e-2), float(jnp.max(jnp.abs(out - ref)))

    print("KERNEL_OK")
</pallas_src>

<mosaic_0001>
module attributes {stable_mosaic.version = 11 : i64} {
  func.func @_conv_stats_kernel(%arg0: i32, %arg1: memref<128x64xbf16, #tpu.memory_space<vmem>>, %arg2: memref<64x128xbf16, #tpu.memory_space<vmem>>, %arg3: memref<1x128xf32, #tpu.memory_space<vmem>>, %arg4: memref<1x128xf32, #tpu.memory_space<vmem>>, %arg5: memref<128x128xf32, #tpu.memory_space<vmem>>, %arg6: memref<8x128xf32, #tpu.memory_space<vmem>>) attributes {dimension_semantics = [#tpu.dimension_semantics<arbitrary>], iteration_bounds = array<i64: 1>, scalar_prefetch = 0 : i64, scratch_operands = 0 : i64, tpu.core_type = #tpu.core_type<tc>, window_params = [{transform_indices = @transform_0, window_bounds = array<i64: 128, 64>}, {pipeline_mode = #tpu.pipeline_mode<synchronous>, transform_indices = @transform_1, window_bounds = array<i64: 64, 128>}, {pipeline_mode = #tpu.pipeline_mode<synchronous>, transform_indices = @transform_2, window_bounds = array<i64: 1, 128>}, {pipeline_mode = #tpu.pipeline_mode<synchronous>, transform_indices = @transform_3, window_bounds = array<i64: 1, 128>}, {transform_indices = @transform_4, window_bounds = array<i64: 128, 128>}, {pipeline_mode = #tpu.pipeline_mode<synchronous>, transform_indices = @transform_5, window_bounds = array<i64: 8, 128>}]} {
    %c0 = arith.constant 0 : index
    %c0_0 = arith.constant 0 : index
    %0 = vector.load %arg1[%c0, %c0_0] : memref<128x64xbf16, #tpu.memory_space<vmem>>, vector<128x64xbf16>
    %c0_1 = arith.constant 0 : index
    %c0_2 = arith.constant 0 : index
    %1 = vector.load %arg2[%c0_1, %c0_2] : memref<64x128xbf16, #tpu.memory_space<vmem>>, vector<64x128xbf16>
    %cst = arith.constant dense<0.000000e+00> : vector<128x128xf32>
    %2 = tpu.matmul %0, %1, %cst {dimension_numbers = #tpu.dot_dimension_numbers<[1], [0], [0], [1], [0, 0, 1, 1], [], []>} : vector<128x64xbf16>, vector<64x128xbf16>, vector<128x128xf32> -> vector<128x128xf32>
    %c0_3 = arith.constant 0 : index
    %c0_4 = arith.constant 0 : index
    %3 = vector.load %arg5[%c0_3, %c0_4] : memref<128x128xf32, #tpu.memory_space<vmem>>, vector<128x128xf32>
    tpu.vector_store %arg5[%c0_3, %c0_4], %2 {strides = array<i32>} : memref<128x128xf32, #tpu.memory_space<vmem>>, vector<128x128xf32>,
    %c0_i32 = arith.constant 0 : i32
    %4 = arith.cmpi eq, %arg0, %c0_i32 : i32
    %5 = arith.extui %4 : i1 to i32
    %c0_i32_5 = arith.constant 0 : i32
    %6 = arith.cmpi ne, %5, %c0_i32_5 : i32
    scf.if %6 {
      %cst_17 = arith.constant 0.000000e+00 : f32
      %21 = vector.broadcast %cst_17 : f32 to vector<8x128xf32>
      %c0_18 = arith.constant 0 : index
      %c0_19 = arith.constant 0 : index
      %22 = vector.load %arg6[%c0_18, %c0_19] : memref<8x128xf32, #tpu.memory_space<vmem>>, vector<8x128xf32>
      tpu.vector_store %arg6[%c0_18, %c0_19], %21 {strides = array<i32>} : memref<8x128xf32, #tpu.memory_space<vmem>>, vector<8x128xf32>,
    } else {
    }
    %c0_6 = arith.constant 0 : index
    %c0_7 = arith.constant 0 : index
    %7 = vector.load %arg6[%c0_6, %c0_7] : memref<8x128xf32, #tpu.memory_space<vmem>>, vector<1x128xf32>
    %cst_8 = arith.constant dense<0.000000e+00> : vector<128xf32>
    %8 = vector.multi_reduction <add>, %2, %cst_8 [0] : vector<128x128xf32> to vector<128xf32>
    %9 = vector.shape_cast %8 : vector<128xf32> to vector<1x128xf32>
    %10 = arith.addf %7, %9 : vector<1x128xf32>
    %c0_9 = arith.constant 0 : index
    %c0_10 = arith.constant 0 : index
    %11 = vector.load %arg6[%c0_9, %c0_10] : memref<8x128xf32, #tpu.memory_space<vmem>>, vector<1x128xf32>
    tpu.vector_store %arg6[%c0_9, %c0_10], %10 {strides = array<i32>} : memref<8x128xf32, #tpu.memory_space<vmem>>, vector<1x128xf32>,
    %c1 = arith.constant 1 : index
    %c0_11 = arith.constant 0 : index
    %12 = vector.load %arg6[%c1, %c0_11] : memref<8x128xf32, #tpu.memory_space<vmem>>, vector<1x128xf32>
    %13 = arith.mulf %2, %2 : vector<128x128xf32>
    %cst_12 = arith.constant dense<0.000000e+00> : vector<128xf32>
    %14 = vector.multi_reduction <add>, %13, %cst_12 [0] : vector<128x128xf32> to vector<128xf32>
    %15 = vector.shape_cast %14 : vector<128xf32> to vector<1x128xf32>
    %16 = arith.addf %12, %15 : vector<1x128xf32>
    %c1_13 = arith.constant 1 : index
    %c0_14 = arith.constant 0 : index
    %17 = vector.load %arg6[%c1_13, %c0_14] : memref<8x128xf32, #tpu.memory_space<vmem>>, vector<1x128xf32>
    tpu.vector_store %arg6[%c1_13, %c0_14], %16 {strides = array<i32>} : memref<8x128xf32, #tpu.memory_space<vmem>>, vector<1x128xf32>,
    %c0_i32_15 = arith.constant 0 : i32
    %18 = arith.cmpi eq, %arg0, %c0_i32_15 : i32
    %19 = arith.extui %18 : i1 to i32
    %c0_i32_16 = arith.constant 0 : i32
    %20 = arith.cmpi ne, %19, %c0_i32_16 : i32
    scf.if %20 {
      %c0_17 = arith.constant 0 : index
      %c0_18 = arith.constant 0 : index
      %21 = vector.load %arg6[%c0_17, %c0_18] : memref<8x128xf32, #tpu.memory_space<vmem>>, vector<1x128xf32>
      %cst_19 = arith.constant 7.812500e-03 : f32
      %22 = vector.broadcast %cst_19 : f32 to vector<1x128xf32>
      %23 = arith.mulf %21, %22 : vector<1x128xf32>
      %c1_20 = arith.constant 1 : index
      %c0_21 = arith.constant 0 : index
      %24 = vector.load %arg6[%c1_20, %c0_21] : memref<8x128xf32, #tpu.memory_space<vmem>>, vector<1x128xf32>
      %cst_22 = arith.constant 7.812500e-03 : f32
      %25 = vector.broadcast %cst_22 : f32 to vector<1x128xf32>
      %26 = arith.mulf %24, %25 : vector<1x128xf32>
      %27 = arith.mulf %23, %23 : vector<1x128xf32>
      %28 = arith.subf %26, %27 : vector<1x128xf32>
      %c0_23 = arith.constant 0 : index
      %c0_24 = arith.constant 0 : index
      %29 = vector.load %arg3[%c0_23, %c0_24] : memref<1x128xf32, #tpu.memory_space<vmem>>, vector<1x128xf32>
      %cst_25 = arith.constant 9.99999974E-6 : f32
      %30 = vector.broadcast %cst_25 : f32 to vector<1x128xf32>
      %31 = arith.addf %28, %30 : vector<1x128xf32>
      %32 = math.rsqrt %31 : vector<1x128xf32>
      %33 = arith.mulf %29, %32 : vector<1x128xf32>
      %c0_26 = arith.constant 0 : index
      %c0_27 = arith.constant 0 : index
      %34 = vector.load %arg4[%c0_26, %c0_27] : memref<1x128xf32, #tpu.memory_space<vmem>>, vector<1x128xf32>
      %35 = arith.mulf %23, %33 : vector<1x128xf32>
      %36 = arith.subf %34, %35 : vector<1x128xf32>
      %c0_28 = arith.constant 0 : index
      %c0_29 = arith.constant 0 : index
      %37 = vector.load %arg6[%c0_28, %c0_29] : memref<8x128xf32, #tpu.memory_space<vmem>>, vector<1x128xf32>
      tpu.vector_store %arg6[%c0_28, %c0_29], %33 {strides = array<i32>} : memref<8x128xf32, #tpu.memory_space<vmem>>, vector<1x128xf32>,
      %c1_30 = arith.constant 1 : index
      %c0_31 = arith.constant 0 : index
      %38 = vector.load %arg6[%c1_30, %c0_31] : memref<8x128xf32, #tpu.memory_space<vmem>>, vector<1x128xf32>
      tpu.vector_store %arg6[%c1_30, %c0_31], %36 {strides = array<i32>} : memref<8x128xf32, #tpu.memory_space<vmem>>, vector<1x128xf32>,
    } else {
    }
    return
  }
  func.func @transform_0(%arg0: i32) -> (i32, i32) {
    %c0_i32 = arith.constant 0 : i32
    %c0_i32_0 = arith.constant 0 : i32
    return %arg0, %c0_i32 : i32, i32
  }
  func.func @transform_1(%arg0: i32) -> (i32, i32) {
    %c0_i32 = arith.constant 0 : i32
    %c0_i32_0 = arith.constant 0 : i32
    %c0_i32_1 = arith.constant 0 : i32
    return %c0_i32, %c0_i32_0 : i32, i32
  }
  func.func @transform_2(%arg0: i32) -> (i32, i32) {
    %c0_i32 = arith.constant 0 : i32
    %c0_i32_0 = arith.constant 0 : i32
    %c0_i32_1 = arith.constant 0 : i32
    return %c0_i32, %c0_i32_0 : i32, i32
  }
  func.func @transform_3(%arg0: i32) -> (i32, i32) {
    %c0_i32 = arith.constant 0 : i32
    %c0_i32_0 = arith.constant 0 : i32
    %c0_i32_1 = arith.constant 0 : i32
    return %c0_i32, %c0_i32_0 : i32, i32
  }
  func.func @transform_4(%arg0: i32) -> (i32, i32) {
    %c0_i32 = arith.constant 0 : i32
    %c0_i32_0 = arith.constant 0 : i32
    return %arg0, %c0_i32 : i32, i32
  }
  func.func @transform_5(%arg0: i32) -> (i32, i32) {
    %c0_i32 = arith.constant 0 : i32
    %c0_i32_0 = arith.constant 0 : i32
    %c0_i32_1 = arith.constant 0 : i32
    return %c0_i32, %c0_i32_0 : i32, i32
  }
}

</mosaic_0001>

<bundles_post_ra>
// kernel: tpu_custom_call.1
= control target key start
LH: loop header
LB: loop body
LE: loop exit
PB: predicated region body
PF: predicated region fallthrough
CT: control target
= control target key end

     0   :  { %11 = vsyncpa [#allocation3], 0  ;;  %s572_s0 = inlined_call_operand.vmem [shape: bf16[128,64], index: 0, kind: input, shape index: {}]   ;;  %s573_s1 = inlined_call_operand.vmem [shape: bf16[64,128], index: 1, kind: input, shape index: {}]   ;;  %s574_s2 = inlined_call_operand.vmem [shape: f32[1,128], index: 2, kind: input, shape index: {}]   ;;  %s575_s3 = inlined_call_operand.vmem [shape: f32[1,128], index: 3, kind: input, shape index: {}]   ;;  %s576_s4 = inlined_call_operand.hbm [shape: f32[128,128], index: 4, kind: output, shape index: {0}]   ;;  %s577_s5 = inlined_call_operand.hbm [shape: f32[8,128], index: 5, kind: output, shape index: {1}]  }
   0x1   :  { %v397_v0 = vld [vmem:[%s573_s1 + $0x18] sm:$0xff]  ;;  %v396_v1 = vld [vmem:[%s573_s1 + $0x10] sm:$0xff] }
   0x2   :  { %139 = vmatpush.bf16.msra.mxu0 %v397_v0  ;;  %398 = vmatpush.bf16.msra.mxu1 %v397_v0 }
   0x3   :  { %399 = vmatpush.bf16.msra.mxu2 %v397_v0  ;;  %400 = vmatpush.bf16.msra.mxu3 %v397_v0 }
   0x4   :  { %12 = vsyncpa [#allocation5], 0  ;;  %v395_v2 = vld [vmem:[%s573_s1 + $0x8] sm:$0xff]  ;;  %v394_v3 = vld [vmem:[%s573_s1] sm:$0xff]  ;;  %vm110_vm0 = vcmask 523264   ;;  %s302_s19 = sshll.u32 %s576_s4, 4  ;;  %s303_s19 = int_to_ptr.hbm [resolvable:$true] %s302_s19 }
   0x5   :  { %v386_v4 = vld [vmem:[%s572_s0] sm:$0xff]  ;;  %v388_v5 = vld [vmem:[%s572_s0 + $0x10] sm:$0xff]  ;;  %v387_v8 = vld [vmem:[%s572_s0 + $0x8] sm:$0xff]  ;;  %v470_v38 = vmov 0.0   ;;  %s471_s20 = smov 128   ;;  %s472_s21 = smov 8  }
   0x6   :  { %140 = vmatpush.bf16.msra.mxu0 %v396_v1  ;;  %401 = vmatpush.bf16.msra.mxu1 %v396_v1  ;;  %v390_v6 = vld [vmem:[%s572_s0 + $0x20] sm:$0xff]  ;;  %v392_v7 = vld [vmem:[%s572_s0 + $0x30] sm:$0xff]  ;;  %v389_v9 = vld [vmem:[%s572_s0 + $0x18] sm:$0xff]  ;;  %204 = vst [vmem:[#allocation4] sm:$0xff] %v470_v38  ;;  %s473_s25 = smov [#allocation4]   ;;  %s316_s29 = sshll.u32 %s577_s5, 4  ;;  %s317_s29 = int_to_ptr.hbm [resolvable:$true] %s316_s29 }
   0x7   :  { %402 = vmatpush.bf16.msra.mxu2 %v396_v1  ;;  %403 = vmatpush.bf16.msra.mxu3 %v396_v1  ;;  %v391_v10 = vld [vmem:[%s572_s0 + $0x28] sm:$0xff]  ;;  %v393_v11 = vld [vmem:[%s572_s0 + $0x38] sm:$0xff]  ;;  %s469_s0 = smov [#allocation2]   ;;  %s314_s26 = sshll.u32 %s473_s25, 4  ;;  %s315_s26 = int_to_ptr.vmem [resolvable:$true] %s314_s26 }
   0x8   :  { %s300_s16 = sshll.u32 %s469_s0, 4  ;;  %s301_s16 = int_to_ptr.vmem [resolvable:$true] %s300_s16 }
   0xa   :  { %141 = vmatpush.bf16.msra.mxu0 %v395_v2  ;;  %404 = vmatpush.bf16.msra.mxu1 %v395_v2 }
   0xb   :  { %405 = vmatpush.bf16.msra.mxu2 %v395_v2  ;;  %406 = vmatpush.bf16.msra.mxu3 %v395_v2 }
   0xe   :  { %142 = vmatpush.bf16.msra.mxu0 %v394_v3  ;;  %407 = vmatpush.bf16.msra.mxu1 %v394_v3 }
   0xf   :  { %408 = vmatpush.bf16.msra.mxu2 %v394_v3  ;;  %409 = vmatpush.bf16.msra.mxu3 %v394_v3 }
  0x11   :  { %378 = vmatmul.msk.bf16.vlgmr.msra.gmra.mxu0 %vm110_vm0, %v386_v4  ;;  %380 = vmatmul.msk.bf16.vlgmr.msra.gmra.mxu1 %vm110_vm0, %v388_v5 }
  0x12   :  { %382 = vmatmul.msk.bf16.vlgmr.msra.gmra.mxu2 %vm110_vm0, %v390_v6  ;;  %384 = vmatmul.msk.bf16.vlgmr.msra.gmra.mxu3 %vm110_vm0, %v392_v7 }
  0x21   :  { %379 = vmatmul.msk.bf16.gmra.mxu0 %vm110_vm0, %v387_v8  ;;  %381 = vmatmul.msk.bf16.gmra.mxu1 %vm110_vm0, %v389_v9 }
  0x22   :  { %383 = vmatmul.msk.bf16.gmra.mxu2 %vm110_vm0, %v391_v10  ;;  %385 = vmatmul.msk.bf16.gmra.mxu3 %vm110_vm0, %v393_v11 }
  0x8e   :  { %v144_v12 = vpop.f32.mrf.mxu0  ;;  %v154_v13 = vpop.f32.mrf.mxu1 }
  0x8f   :  { %184 = vst [vmem:[#allocation2] sm:$0xff] %v144_v12  ;;  %v230_v23 = vmul.f32 %v144_v12, %v144_v12  ;;  %v234_v35 = vmul.f32 %v154_v13, %v154_v13 }
  0x90   :  { %188 = vst [vmem:[#allocation2 + $0x20] sm:$0xff] %v154_v13 }
  0x95   :  { %v164_v14 = vpop.f32.mrf.mxu2  ;;  %v548_v15 = vpop.f32.mrf.mxu3 }
  0x96   :  { %v146_v16 = vpop.f32.mrf.mxu0  ;;  %v156_v17 = vpop.f32.mrf.mxu1  ;;  %192 = vst [vmem:[#allocation2 + $0x40] sm:$0xff] %v164_v14  ;;  %v238_v50 = vmul.f32 %v164_v14, %v164_v14  ;;  %v242_v62 = vmul.f32 %v548_v15, %v548_v15 }
  0x97   :  { %185 = vst [vmem:[#allocation2 + $0x8] sm:$0xff] %v146_v16  ;;  %v231_v22 = vmul.f32 %v146_v16, %v146_v16  ;;  %v206_v24 = vadd.f32 %v146_v16, %v144_v12  ;;  %v235_v39 = vmul.f32 %v156_v17, %v156_v17 }
  0x98   :  { %189 = vst [vmem:[#allocation2 + $0x28] sm:$0xff] %v156_v17 }
  0x99   :  { %196 = vst [vmem:[#allocation2 + $0x60] sm:$0xff] %v548_v15  ;;  %v246_v26 = vadd.f32 %v231_v22, %v230_v23 }
  0x9d   :  { %v166_v18 = vpop.f32.mrf.mxu2  ;;  %v551_v19 = vpop.f32.mrf.mxu3 }
  0x9e   :  { %v149_v20 = vpop.f32.mrf.mxu0  ;;  %v159_v21 = vpop.f32.mrf.mxu1  ;;  %193 = vst [vmem:[#allocation2 + $0x48] sm:$0xff] %v166_v18  ;;  %v239_v53 = vmul.f32 %v166_v18, %v166_v18  ;;  %v243_v1 = vmul.f32 %v551_v19, %v551_v19 }
  0x9f   :  { %186 = vst [vmem:[#allocation2 + $0x10] sm:$0xff] %v149_v20  ;;  %v232_v25 = vmul.f32 %v149_v20, %v149_v20  ;;  %v207_v27 = vadd.f32 %v206_v24, %v149_v20  ;;  %v236_v42 = vmul.f32 %v159_v21, %v159_v21 }
  0xa0   :  { %190 = vst [vmem:[#allocation2 + $0x30] sm:$0xff] %v159_v21 }
  0xa1   :  { %197 = vst [vmem:[#allocation2 + $0x68] sm:$0xff] %v551_v19  ;;  %v247_v32 = vadd.f32 %v246_v26, %v232_v25 }
  0xa5   :  { %v169_v28 = vpop.f32.mrf.mxu2  ;;  %v179_v29 = vpop.f32.mrf.mxu3 }
  0xa6   :  { %v151_v30 = vpop.f32.mrf.mxu0  ;;  %v161_v31 = vpop.f32.mrf.mxu1  ;;  %194 = vst [vmem:[#allocation2 + $0x50] sm:$0xff] %v169_v28  ;;  %v240_v57 = vmul.f32 %v169_v28, %v169_v28  ;;  %v244_v5 = vmul.f32 %v179_v29, %v179_v29 }
  0xa7   :  { %187 = vst [vmem:[#allocation2 + $0x18] sm:$0xff] %v151_v30  ;;  %v208_v33 = vadd.f32 %v207_v27, %v151_v30  ;;  %v233_v34 = vmul.f32 %v151_v30, %v151_v30  ;;  %v237_v48 = vmul.f32 %v161_v31, %v161_v31 }
  0xa8   :  { %191 = vst [vmem:[#allocation2 + $0x38] sm:$0xff] %v161_v31 }
  0xa9   :  { %v209_v36 = vadd.f32 %v208_v33, %v154_v13  ;;  %v248_v37 = vadd.f32 %v247_v32, %v233_v34  ;;  %198 = vst [vmem:[#allocation2 + $0x70] sm:$0xff] %v179_v29 }
  0xab   :  { %v249_v40 = vadd.f32 %v248_v37, %v234_v35  ;;  %v210_v41 = vadd.f32 %v209_v36, %v156_v17 }
  0xad   :  { %v211_v43 = vadd.f32 %v210_v41, %v159_v21  ;;  %v250_v44 = vadd.f32 %v249_v40, %v235_v39  ;;  %v171_v45 = vpop.f32.mrf.mxu2  ;;  %v181_v46 = vpop.f32.mrf.mxu3  ;;  %v205_v21 = vld [vmem:[#allocation4] sm:$0x1] }
  0xae   :  { %195 = vst [vmem:[#allocation2 + $0x58] sm:$0xff] %v171_v45  ;;  %v241_v61 = vmul.f32 %v171_v45, %v171_v45  ;;  %v245_v9 = vmul.f32 %v181_v46, %v181_v46  ;;  %v278_v39 = vld [vmem:[%s574_s2] sm:$0x1] }
  0xaf   :  { %v212_v47 = vadd.f32 %v211_v43, %v161_v31  ;;  %v251_v49 = vadd.f32 %v250_v44, %v236_v42  ;;  %199 = vst [vmem:[#allocation2 + $0x78] sm:$0xff] %v181_v46  ;;  %v291_v43 = vld [vmem:[%s575_s3] sm:$0x1] }
  0xb0   :  { %308 = dma.vmem_to_hbm [thread:$0]  %s301_s16, 2048, %s303_s19, [#allocation3], %s471_s20, %s471_s20, %s472_s21  }
  0xb1   :  { %v213_v51 = vadd.f32 %v212_v47, %v164_v14  ;;  %v252_v52 = vadd.f32 %v251_v49, %v237_v48 }
  0xb3   :  { %v253_v54 = vadd.f32 %v252_v52, %v238_v50  ;;  %v214_v55 = vadd.f32 %v213_v51, %v166_v18 }
  0xb5   :  { %v215_v56 = vadd.f32 %v214_v55, %v169_v28  ;;  %v254_v58 = vadd.f32 %v253_v54, %v239_v53 }
  0xb7   :  { %v255_v59 = vadd.f32 %v254_v58, %v240_v57  ;;  %v216_v60 = vadd.f32 %v215_v56, %v171_v45 }
  0xb9   :  { %v217_v63 = vadd.f32 %v216_v60, %v548_v15  ;;  %v256_v0 = vadd.f32 %v255_v59, %v241_v61 }
  0xbb   :  { %v257_v2 = vadd.f32 %v256_v0, %v242_v62  ;;  %v218_v3 = vadd.f32 %v217_v63, %v551_v19  ;;  %v229_v19 = vld [vmem:[#allocation4 + $0x1] sm:$0x1] }
  0xbd   :  { %v219_v4 = vadd.f32 %v218_v3, %v179_v29  ;;  %v258_v6 = vadd.f32 %v257_v2, %v243_v1 }
  0xbf   :  { %v259_v7 = vadd.f32 %v258_v6, %v244_v5  ;;  %v220_v8 = vadd.f32 %v219_v4, %v181_v46 }
  0xc1   :  { %v221_v10 = vrot.slane %v220_v8, 4  ;;  %v260_v11 = vadd.f32 %v259_v7, %v245_v9 }
  0xc3   :  { %v222_v12 = vadd.f32 %v221_v10, %v220_v8  ;;  %v261_v13 = vrot.slane %v260_v11, 4 }
  0xc5   :  { %v223_v14 = vrot.slane %v222_v12, 2  ;;  %v262_v16 = vadd.f32 %v261_v13, %v260_v11 }
  0xc7   :  { %v224_v15 = vadd.f32 %v223_v14, %v222_v12  ;;  %v263_v17 = vrot.slane %v262_v16, 2 }
  0xc9   :  { %v225_v18 = vrot.slane %v224_v15, 1  ;;  %v264_v20 = vadd.f32 %v263_v17, %v262_v16 }
  0xcb   :  { %v226_v22 = vadd.f32 %v225_v18, %v224_v15  ;;  %v265_v23 = vrot.slane %v264_v20, 1 }
  0xcd   :  { %v266_v24 = vadd.f32 %v265_v23, %v264_v20  ;;  %v227_v25 = vadd.f32 %v226_v22, %v205_v21 }
  0xcf   :  { %228 = vst [vmem:[#allocation4] sm:$0x1] %v227_v25  ;;  %v267_v26 = vadd.f32 %v266_v24, %v229_v19 }
  0xd1   :  { %268 = vst [vmem:[#allocation4 + $0x1] sm:$0x1] %v267_v26 }
  0xd6   :  { %v272_v27 = vld [vmem:[#allocation4] sm:$0x1] }
  0xd7   :  { %v273_v28 = vmul.f32 0.0078125, %v272_v27 }
  0xd8   :  { %v274_v29 = vld [vmem:[#allocation4 + $0x1] sm:$0x1] }
  0xd9   :  { %v275_v30 = vmul.f32 0.0078125, %v274_v29  ;;  %v276_v31 = vmul.f32 %v273_v28, %v273_v28 }
  0xdb   :  { %v277_v32 = vsub.f32 %v275_v30, %v276_v31 }
  0xdd   :  { %v279_v33 = vadd.f32 1e-05, %v277_v32 }
  0xdf   :  { %415 = vrsqrt.f32 %v279_v33  ;;  %vm286_vm2 = vweird.f32 %v279_v33 }
  0xe5   :  { %v416_v34 = vpop.eup %415 }
  0xe6   :  { %v281_v35 = vmul.f32 %v416_v34, %v279_v33  ;;  %vm287_vm1 = vweird.f32 %v416_v34 }
  0xe7   :  { %vm288_vm3 = vmor %vm286_vm2, %vm287_vm1 }
  0xe8   :  { %v282_v36 = vmul.f32 %v416_v34, %v281_v35 }
  0xea   :  { %v283_v37 = vmul.f32 0.5, %v282_v36 }
  0xec   :  { %v284_v38 = vsub.f32 1.5, %v283_v37 }
  0xee   :  { %v285_v40 = vmul.f32 %v416_v34, %v284_v38 }
  0xf0   :  { %v289_v41 = vsel %vm288_vm3, %v416_v34, %v285_v40 }
  0xf1   :  { %v290_v42 = vmul.f32 %v289_v41, %v278_v39 }
  0xf3   :  { %v292_v44 = vmul.f32 %v290_v42, %v273_v28  ;;  %294 = vst [vmem:[#allocation4] sm:$0x1] %v290_v42 }
  0xf5   :  { %v293_v45 = vsub.f32 %v291_v43, %v292_v44 }
  0xf7   :  { %295 = vst [vmem:[#allocation4 + $0x1] sm:$0x1] %v293_v45 }
  0xf8   :  { %319 = dma.vmem_to_hbm [thread:$0]  %s315_s26, 128, %s317_s29, [#allocation5]  }
  0xf9   :  { %465 = dma.done.wait [#allocation3], 2048  }
  0xfa   :  { %466 = vsyncadd [#allocation3], 4294965248 }
  0xfb   :  { %467 = dma.done.wait [#allocation5], 128  }
  0xfc   :  { %468 = vsyncadd [#allocation5], 4294967168 }
  0xfd   :  { %328 = vsyncpa [#allocation3], 1 }
  0xfe   :  { %329 = vsyncpa [#allocation5], 1 }

</bundles_post_ra>
